<compile_context>
chip_gen: v6e
topology: v6e:2x2x1
jax: 0.10.0
libtpu: 0.0.40
codegen_flags: <defaults>
</compile_context>

<pallas_src>
import functools

import jax
import jax.numpy as jnp
from jax import lax
from jax.experimental import pallas as pl
from jax.experimental.pallas import tpu as pltpu

# ------------------------- module-level constants ---------------------------
BLOCK_SIZE = 128          # T (the module asserts T == BLOCK_SIZE)
EMBEDDING_DIM = 128       # C
DROPOUT = 0.2             # eval-mode => identity (unused)
HEAD_SIZE = 32            # head_size constructor arg for the example run


# =============================== kernel =====================================
def _attn_head_kernel(src_ref, tgt_ref, mask_ref, wq_ref, wkvT_ref, o_ref, *,
                      head_size, causal):
    """One (batch) grid step of a single attention head, fully fused."""
    hs = head_size
    neg_fill = jnp.float32(-1e30)          # finite mask fill (avoids NaN from exp(-inf - -inf))

    src = src_ref[0].astype(jnp.bfloat16)  # (T, D)  (no-op if upstream already feeds bf16)
    tgt = tgt_ref[0].astype(jnp.bfloat16)  # (T, D)

    # Q projection; the 1/sqrt(hs) score scale is already folded into the bf16 weights.
    q = jnp.dot(tgt, wq_ref[...], preferred_element_type=jnp.float32)      # (T, hs)

    # Fused, transposed K|V projection: (2*hs, D) . contract D . (T, D) -> (2*hs, T).
    # Result is lane-dense (T=128 lanes); K/V split is a clean sublane slice at 32.
    kvT = lax.dot_general(wkvT_ref[...], src, (((1,), (1,)), ((), ())),
                          preferred_element_type=jnp.float32)              # (2*hs, T)
    kT = kvT[:hs]                                                          # (hs, T)
    vT = kvT[hs:]                                                          # (hs, T)

    # Scores via a native (T,hs)@(hs,T) matmul — lane-dense (T,T), no explicit k.T.
    wei = jnp.dot(q.astype(jnp.bfloat16), kT.astype(jnp.bfloat16),
                  preferred_element_type=jnp.float32)                      # (T, T)
    t = wei.shape[0]

    # Single fused mask select: key-padding (broadcast over query rows) & causal.
    keep = mask_ref[0] > 0.5                                               # (1, T)
    if causal:
        row = lax.broadcasted_iota(jnp.int32, (t, t), 0)
        col = lax.broadcasted_iota(jnp.int32, (t, t), 1)
        keep = jnp.logical_and(keep, col <= row)                           # (T, T)
    wei = jnp.where(keep, wei, neg_fill)

    # Numerically-stable softmax; divide -> approx reciprocal on the EUP slot.
    m = jnp.max(wei, axis=-1, keepdims=True)
    e = jnp.exp(wei - m)
    p = e * pl.reciprocal(jnp.sum(e, axis=-1, keepdims=True), approx=True)

    # Dropout on attention weights is identity in eval mode.
    # out^T = V^T @ P^T -> (hs, T): lane-dense, unmasked full-lane stores.
    o_ref[0] = lax.dot_general(vT.astype(jnp.bfloat16), p.astype(jnp.bfloat16),
                               (((1,), (1,)), ((), ())),
                               preferred_element_type=jnp.float32)         # (hs, T)


def generic_attention_head(source_embedding, target_embedding, pad_mask,
                           wq, wk, wv, *, needs_future_mask):
    """Forward pass of GenericAttentionHead.  Weights are (D, head_size)."""
    b, t, d = source_embedding.shape
    assert target_embedding.shape == (b, t, d)
    assert t == BLOCK_SIZE and d == EMBEDDING_DIM
    assert pad_mask.shape == (b, t)
    hs = wq.shape[1]

    # One-time weight prep (loop-invariant; the bf16 slabs stay VMEM-resident
    # across grid steps thanks to the constant index_map):
    #   * fold the 1/sqrt(hs) score scale into Wq,
    #   * fuse Wk|Wv into a single transposed (2*hs, D) slab,
    #   * pre-cast both to bf16 once.
    wq_b = (wq * (float(hs) ** -0.5)).astype(jnp.bfloat16)                 # (D, hs)
    wkvT_b = jnp.concatenate([wk.T, wv.T], axis=0).astype(jnp.bfloat16)    # (2*hs, D)
    mask_f = pad_mask.astype(jnp.float32).reshape(b, 1, t)

    kern = functools.partial(_attn_head_kernel, head_size=hs, causal=needs_future_mask)
    out_t = pl.pallas_call(
        kern,
        out_shape=jax.ShapeDtypeStruct((b, hs, t), jnp.float32),
        grid=(b,),
        in_specs=[
            pl.BlockSpec((1, t, d), lambda i: (i, 0, 0)),                  # source
            pl.BlockSpec((1, t, d), lambda i: (i, 0, 0)),                  # target
            pl.BlockSpec((1, 1, t), lambda i: (i, 0, 0)),                  # key-pad mask
            pl.BlockSpec((d, hs), lambda i: (0, 0)),                       # Wq*scale (bf16)
            pl.BlockSpec((2 * hs, d), lambda i: (0, 0)),                   # [Wk^T;Wv^T] (bf16)
        ],
        out_specs=pl.BlockSpec((1, hs, t), lambda i: (i, 0, 0)),           # out^T, lane-dense
        compiler_params=pltpu.CompilerParams(
            dimension_semantics=("parallel",)),                            # both TCs on v7x
    )(source_embedding, target_embedding, mask_f, wq_b, wkvT_b)

    # Kernel emits out^T for lane-dense stores; tiny swap back to (B, T, hs) outside.
    return jnp.swapaxes(out_t, 1, 2)


# ====================== pure-JAX f32 reference (for check) ==================
def _reference(src, tgt, pad_mask, wq, wk, wv, *, needs_future_mask):
    q = tgt @ wq
    k = src @ wk
    v = src @ wv
    wei = jnp.einsum("btd,bsd->bts", q, k) * (k.shape[-1] ** -0.5)
    wei = jnp.where(pad_mask[:, None, :], wei, -jnp.inf)
    if needs_future_mask:
        t = q.shape[1]
        fut = jnp.tril(jnp.ones((t, t), dtype=bool))
        wei = jnp.where(fut[None], wei, -jnp.inf)
    p = jax.nn.softmax(wei, axis=-1)
    return jnp.einsum("bts,bsd->btd", p, v)


# ================================= main ======================================
if __name__ == "__main__":
    key = jax.random.PRNGKey(0)
    k_src, k_tgt, k_wq, k_wk, k_wv = jax.random.split(key, 5)

    B, T, D, HS = 2, BLOCK_SIZE, EMBEDDING_DIM, HEAD_SIZE

    src = jax.random.normal(k_src, (B, T, D), jnp.float32)
    tgt = jax.random.normal(k_tgt, (B, T, D), jnp.float32)
    wq = (0.02 * jax.random.normal(k_wq, (D, HS))).astype(jnp.float32)
    wk = (0.02 * jax.random.normal(k_wk, (D, HS))).astype(jnp.float32)
    wv = (0.02 * jax.random.normal(k_wv, (D, HS))).astype(jnp.float32)

    lengths = jnp.array([100, 60])
    pad_mask = jnp.arange(T)[None, :] < lengths[:, None]           # bool (B, T)

    run_cross = jax.jit(functools.partial(generic_attention_head, needs_future_mask=False))
    run_causal = jax.jit(functools.partial(generic_attention_head, needs_future_mask=True))

    # Cross-attention style call (source != target, no future mask).
    out = run_cross(src, tgt, pad_mask, wq, wk, wv)
    # Causal self-attention style call (source == target, future mask on).
    out_causal = run_causal(src, src, pad_mask, wq, wk, wv)
    jax.block_until_ready((out, out_causal))

    ref = _reference(src, tgt, pad_mask, wq, wk, wv, needs_future_mask=False)
    ref_causal = _reference(src, src, pad_mask, wq, wk, wv, needs_future_mask=True)

    assert out.shape == (B, T, HS) and out_causal.shape == (B, T, HS)
    assert bool(jnp.all(jnp.isfinite(out))) and bool(jnp.all(jnp.isfinite(out_causal)))
    assert bool(jnp.allclose(out, ref, rtol=5e-2, atol=5e-3))
    assert bool(jnp.allclose(out_causal, ref_causal, rtol=5e-2, atol=5e-3))
    print("KERNEL_OK")
</pallas_src>

<mosaic_0001>
module attributes {stable_mosaic.version = 11 : i64} {
  func.func @_attn_head_kernel(%arg0: i32, %arg1: memref<1x128x128xf32, #tpu.memory_space<vmem>>, %arg2: memref<1x128x128xf32, #tpu.memory_space<vmem>>, %arg3: memref<1x1x128xf32, #tpu.memory_space<vmem>>, %arg4: memref<128x32xbf16, #tpu.memory_space<vmem>>, %arg5: memref<64x128xbf16, #tpu.memory_space<vmem>>, %arg6: memref<1x32x128xf32, #tpu.memory_space<vmem>>) attributes {dimension_semantics = [#tpu.dimension_semantics<parallel>], iteration_bounds = array<i64: 2>, scalar_prefetch = 0 : i64, scratch_operands = 0 : i64, tpu.core_type = #tpu.core_type<tc>, window_params = [{transform_indices = @transform_0, window_bounds = array<i64: 1, 128, 128>}, {transform_indices = @transform_1, window_bounds = array<i64: 1, 128, 128>}, {transform_indices = @transform_2, window_bounds = array<i64: 1, 1, 128>}, {pipeline_mode = #tpu.pipeline_mode<synchronous>, transform_indices = @transform_3, window_bounds = array<i64: 128, 32>}, {pipeline_mode = #tpu.pipeline_mode<synchronous>, transform_indices = @transform_4, window_bounds = array<i64: 64, 128>}, {transform_indices = @transform_5, window_bounds = array<i64: 1, 32, 128>}]} {
    %c0 = arith.constant 0 : index
    %c0_0 = arith.constant 0 : index
    %c0_1 = arith.constant 0 : index
    %0 = vector.load %arg1[%c0, %c0_0, %c0_1] : memref<1x128x128xf32, #tpu.memory_space<vmem>>, vector<1x128x128xf32>
    %1 = vector.shape_cast %0 : vector<1x128x128xf32> to vector<128x128xf32>
    %2 = arith.truncf %1 : vector<128x128xf32> to vector<128x128xbf16>
    %c0_2 = arith.constant 0 : index
    %c0_3 = arith.constant 0 : index
    %c0_4 = arith.constant 0 : index
    %3 = vector.load %arg2[%c0_2, %c0_3, %c0_4] : memref<1x128x128xf32, #tpu.memory_space<vmem>>, vector<1x128x128xf32>
    %4 = vector.shape_cast %3 : vector<1x128x128xf32> to vector<128x128xf32>
    %5 = arith.truncf %4 : vector<128x128xf32> to vector<128x128xbf16>
    %c0_5 = arith.constant 0 : index
    %c0_6 = arith.constant 0 : index
    %6 = vector.load %arg4[%c0_5, %c0_6] : memref<128x32xbf16, #tpu.memory_space<vmem>>, vector<128x32xbf16>
    %cst = arith.constant dense<0.000000e+00> : vector<128x32xf32>
    %7 = tpu.matmul %5, %6, %cst {dimension_numbers = #tpu.dot_dimension_numbers<[1], [0], [0], [1], [0, 0, 1, 1], [], []>} : vector<128x128xbf16>, vector<128x32xbf16>, vector<128x32xf32> -> vector<128x32xf32>
    %c0_7 = arith.constant 0 : index
    %c0_8 = arith.constant 0 : index
    %8 = vector.load %arg5[%c0_7, %c0_8] : memref<64x128xbf16, #tpu.memory_space<vmem>>, vector<64x128xbf16>
    %cst_9 = arith.constant dense<0.000000e+00> : vector<64x128xf32>
    %9 = tpu.matmul %8, %2, %cst_9 {dimension_numbers = #tpu.dot_dimension_numbers<[1], [1], [0], [0], [0, 0, 1, 0], [], []>} : vector<64x128xbf16>, vector<128x128xbf16>, vector<64x128xf32> -> vector<64x128xf32>
    %10 = vector.extract_strided_slice %9 {offsets = [0, 0], sizes = [32, 128], strides = [1, 1]} : vector<64x128xf32> to vector<32x128xf32>
    %11 = vector.extract_strided_slice %9 {offsets = [32, 0], sizes = [32, 128], strides = [1, 1]} : vector<64x128xf32> to vector<32x128xf32>
    %12 = arith.truncf %7 : vector<128x32xf32> to vector<128x32xbf16>
    %13 = arith.truncf %10 : vector<32x128xf32> to vector<32x128xbf16>
    %cst_10 = arith.constant dense<0.000000e+00> : vector<128x128xf32>
    %14 = tpu.matmul %12, %13, %cst_10 {dimension_numbers = #tpu.dot_dimension_numbers<[1], [0], [0], [1], [0, 0, 1, 1], [], []>} : vector<128x32xbf16>, vector<32x128xbf16>, vector<128x128xf32> -> vector<128x128xf32>
    %c0_11 = arith.constant 0 : index
    %c0_12 = arith.constant 0 : index
    %c0_13 = arith.constant 0 : index
    %15 = vector.load %arg3[%c0_11, %c0_12, %c0_13] : memref<1x1x128xf32, #tpu.memory_space<vmem>>, vector<1x1x128xf32>
    %16 = vector.shape_cast %15 : vector<1x1x128xf32> to vector<1x128xf32>
    %cst_14 = arith.constant 5.000000e-01 : f32
    %17 = vector.broadcast %cst_14 : f32 to vector<1x128xf32>
    %18 = arith.cmpf ogt, %16, %17 : vector<1x128xf32>
    %cst_15 = arith.constant -1.000000e+30 : f32
    %19 = vector.shape_cast %18 : vector<1x128xi1> to vector<1x128xi1>
    %20 = vector.broadcast %19 : vector<1x128xi1> to vector<128x128xi1>
    %21 = vector.broadcast %cst_15 : f32 to vector<128x128xf32>
    %22 = arith.select %20, %14, %21 : vector<128x128xi1>, vector<128x128xf32>
    %cst_16 = arith.constant dense<0xFF800000> : vector<128xf32>
    %23 = vector.multi_reduction <maximumf>, %22, %cst_16 [1] : vector<128x128xf32> to vector<128xf32>
    %24 = vector.shape_cast %23 : vector<128xf32> to vector<128x1xf32>
    %25 = vector.broadcast %24 : vector<128x1xf32> to vector<128x128xf32>
    %26 = arith.subf %22, %25 : vector<128x128xf32>
    %27 = math.exp %26 : vector<128x128xf32>
    %cst_17 = arith.constant dense<0.000000e+00> : vector<128xf32>
    %28 = vector.multi_reduction <add>, %27, %cst_17 [1] : vector<128x128xf32> to vector<128xf32>
    %29 = vector.shape_cast %28 : vector<128xf32> to vector<128x1xf32>
    %30 = tpu.reciprocal %29 {approx = true} : vector<128x1xf32> -> vector<128x1xf32>
    %31 = vector.broadcast %30 : vector<128x1xf32> to vector<128x128xf32>
    %32 = arith.mulf %27, %31 : vector<128x128xf32>
    %33 = arith.truncf %11 : vector<32x128xf32> to vector<32x128xbf16>
    %34 = arith.truncf %32 : vector<128x128xf32> to vector<128x128xbf16>
    %cst_18 = arith.constant dense<0.000000e+00> : vector<32x128xf32>
    %35 = tpu.matmul %33, %34, %cst_18 {dimension_numbers = #tpu.dot_dimension_numbers<[1], [1], [0], [0], [0, 0, 1, 0], [], []>} : vector<32x128xbf16>, vector<128x128xbf16>, vector<32x128xf32> -> vector<32x128xf32>
    %c0_19 = arith.constant 0 : index
    %c0_20 = arith.constant 0 : index
    %c0_21 = arith.constant 0 : index
    %36 = vector.load %arg6[%c0_19, %c0_20, %c0_21] : memref<1x32x128xf32, #tpu.memory_space<vmem>>, vector<1x32x128xf32>
    %37 = vector.shape_cast %36 : vector<1x32x128xf32> to vector<32x128xf32>
    %38 = vector.shape_cast %35 : vector<32x128xf32> to vector<1x32x128xf32>
    tpu.vector_store %arg6[%c0_19, %c0_20, %c0_21], %38 {strides = array<i32>} : memref<1x32x128xf32, #tpu.memory_space<vmem>>, vector<1x32x128xf32>,
    return
  }
  func.func @transform_0(%arg0: i32) -> (i32, i32, i32) {
    %c0_i32 = arith.constant 0 : i32
    %c0_i32_0 = arith.constant 0 : i32
    %c0_i32_1 = arith.constant 0 : i32
    return %arg0, %c0_i32, %c0_i32_0 : i32, i32, i32
  }
  func.func @transform_1(%arg0: i32) -> (i32, i32, i32) {
    %c0_i32 = arith.constant 0 : i32
    %c0_i32_0 = arith.constant 0 : i32
    %c0_i32_1 = arith.constant 0 : i32
    return %arg0, %c0_i32, %c0_i32_0 : i32, i32, i32
  }
  func.func @transform_2(%arg0: i32) -> (i32, i32, i32) {
    %c0_i32 = arith.constant 0 : i32
    %c0_i32_0 = arith.constant 0 : i32
    %c0_i32_1 = arith.constant 0 : i32
    return %arg0, %c0_i32, %c0_i32_0 : i32, i32, i32
  }
  func.func @transform_3(%arg0: i32) -> (i32, i32) {
    %c0_i32 = arith.constant 0 : i32
    %c0_i32_0 = arith.constant 0 : i32
    %c0_i32_1 = arith.constant 0 : i32
    return %c0_i32, %c0_i32_0 : i32, i32
  }
  func.func @transform_4(%arg0: i32) -> (i32, i32) {
    %c0_i32 = arith.constant 0 : i32
    %c0_i32_0 = arith.constant 0 : i32
    %c0_i32_1 = arith.constant 0 : i32
    return %c0_i32, %c0_i32_0 : i32, i32
  }
  func.func @transform_5(%arg0: i32) -> (i32, i32, i32) {
    %c0_i32 = arith.constant 0 : i32
    %c0_i32_0 = arith.constant 0 : i32
    %c0_i32_1 = arith.constant 0 : i32
    return %arg0, %c0_i32, %c0_i32_0 : i32, i32, i32
  }
}

</mosaic_0001>

<bundles_post_ra>
// kernel: generic_attention_head.1
= control target key start
LH: loop header
LB: loop body
LE: loop exit
PB: predicated region body
PF: predicated region fallthrough
CT: control target
= control target key end

     0   :  { %10 = vsyncpa [#allocation3], 0  ;;  %s1720_s0 = inlined_call_operand.vmem [shape: f32[2,128,128], index: 0, kind: input, shape index: {}]   ;;  %s1721_s1 = inlined_call_operand.vmem [shape: f32[2,128,128], index: 1, kind: input, shape index: {}]   ;;  %s1722_s2 = inlined_call_operand.vmem [shape: f32[2,1,128], index: 2, kind: input, shape index: {}]   ;;  %s1723_s3 = inlined_call_operand.vmem [shape: bf16[128,32], index: 3, kind: input, shape index: {}]   ;;  %s1724_s4 = inlined_call_operand.vmem [shape: bf16[64,128], index: 4, kind: input, shape index: {}]   ;;  %s1725_s5 = inlined_call_operand.hbm [shape: f32[2,32,128], index: 5, kind: output, shape index: {}]  }
   0x1   :  { %12 = vsyncpa [#allocation3 + $0x1], 0  ;;  %s1419_s18 = smov 0   ;;  %s1421_s19 = smov 0  }
   0x2   :  { %s1423_s20 = smov 0   ;;  %s1425_s21 = smov 0  }
   0x3 LB: > { %s1440_s22 = sadd.s32 4294967295, %s1383_s21   ;;  %s1024_s23 = sadd.s32 4294967294, %s1383_s21   ;;  %s1383_s21 = sphi %s1425_s21, %s1731_s21   ;;  %s1379_s20 = sphi %s1423_s20, %s1730_s20   ;;  %s1375_s19 = sphi %s1421_s19, %s1729_s19   ;;  %s1371_s18 = sphi %s1419_s18, %s1728_s18  }
   0x4   : > { %s1444_s24 = sadd.s32 1, %s1383_s21   ;;  %s145_s25 = sadd.s32 1, %s1379_s20 }
   0x5   : > { %s142_s26 = ssub.s32 %s1383_s21, %s1444_s24  ;;  %p155_p0 = scmp.ne.s32.totalorder %s1379_s20, %s1375_s19 }
   0x6   : > { %p143_p1 = scmp.eq.s32.totalorder %s142_s26, 0  ;;  %p156_p2 = scmp.eq.s32.totalorder %s1440_s22, 1 }
   0x7   : > { %p161_p3 = scmp.ne.s32.totalorder %s1375_s19, %s1371_s18  ;;  %p162_p4 = scmp.eq.s32.totalorder %s1024_s23, 1 }
   0x8   : > { %s1455_s27 = scalar_select %p143_p1, %s1379_s20, %s145_s25  }
   0x9   : > { %p1457_p5 = por %p156_p2, %p155_p0  ;;  %p1461_p6 = por %p162_p4, %p161_p3 }
   0xa   : > { %p1027_p7 = scmp.ge.s32.totalorder %s1383_s21, 1  ;;  %p208_p8 = scmp.lt.s32.totalorder %s1383_s21, 3 }
   0xc   : > { %p209_p9 = pnand %p1027_p7, %p208_p8 }
   0xd   : > { %p244_p10 = scmp.lt.s32.totalorder (!%p209_p9), %s1440_s22, 1  ;;  %s241_s8 = sand.u32 (!%p209_p9), 1, %s1375_s19  }
   0xe   : > { %212 = sbr.rel (%p209_p9) target bundleno = 1134 (0x46e), region = 40  ;;  %s1028_s10 = sshll.u32 (!%p209_p9), %s241_s8, 5 }
   0xf   : > { %s1060_s14 = sshll.u32 (!%p209_p9), %s1440_s22, 9  ;;  %s1680_s17 = scalar_lea.sflag (!%p209_p9), [#allocation3], %s241_s8 }
  0x13   : > { %v1247_v0 = vld [vmem:[%s1723_s3 + $0x38] sm:$0xff]   ;;  %v1248_v1 = vld [vmem:[%s1723_s3 + $0x30] sm:$0xff]   ;;  %s1475_s9 = scalar_select %p244_p10, %s1440_s22, 1  ;;  %v1249_v2 = vld [vmem:[%s1723_s3 + $0x28] sm:$0xff]   ;;  %vm574_vm0 = vcmask 261120  }
  0x14   : > { %1109 = vmatprep.subr.bf16.mxu1 %v1247_v0  ;;  %v1250_v3 = vld [vmem:[%s1723_s3 + $0x20] sm:$0xff]   ;;  %v1251_v7 = vld [vmem:[%s1723_s3 + $0x18] sm:$0xff]   ;;  %v1252_v8 = vld [vmem:[%s1723_s3 + $0x10] sm:$0xff]   ;;  %s1386_s22 = smov [#allocation2]  }
  0x15   : > { %1110 = vmatpush3.bf16.msra.mxu1 %v1247_v0  ;;  %s1058_s12 = sshll.u32 %s1475_s9, 7  ;;  %v1253_v9 = vld [vmem:[%s1723_s3 + $0x8] sm:$0xff]   ;;  %v1254_v10 = vld [vmem:[%s1723_s3] sm:$0xff]   ;;  %s256_s26 = scalar_lea.vmem %s1722_s2, %s1475_s9 }
  0x16   : > { %1111 = vmatprep.subr.bf16.mxu1 %v1248_v1  ;;  %s1484_s15 = scalar_lea.vmem %s1721_s1, %s1058_s12  ;;  %s1503_s11 = scalar_lea.vmem %s1720_s0, %s1058_s12  ;;  %v1255_v46 = vld [vmem:[%s1724_s4] sm:$0xff]   ;;  %v1256_v57 = vld [vmem:[%s1724_s4 + $0x8] sm:$0xff]  }
  0x17   : > { %v282_v4 = vld [vmem:[%s1484_s15] sm:$0xff]  ;;  %v283_v5 = vld [vmem:[%s1484_s15 + $0x8] sm:$0xff]  ;;  %v272_v11 = vld [vmem:[%s1503_s11 + $0x70] sm:$0xff]  ;;  %s1327_s25 = sshll.u32 %s1386_s22, 4  ;;  %s1328_s25 = int_to_ptr.vmem [resolvable:$false] %s1327_s25 }
  0x18   : > { %v298_v6 = vpack.c.bf16 %v283_v5, %v282_v4  ;;  %v273_v12 = vld [vmem:[%s1503_s11 + $0x78] sm:$0xff]  ;;  %v284_v13 = vld [vmem:[%s1484_s15 + $0x10] sm:$0xff]  ;;  %v286_v16 = vld [vmem:[%s1484_s15 + $0x20] sm:$0xff] }
  0x19   : > { %1112 = vmatpush3.bf16.msra.mxu1 %v1248_v1  ;;  %v285_v14 = vld [vmem:[%s1484_s15 + $0x18] sm:$0xff]  ;;  %v281_v15 = vpack.c.bf16 %v273_v12, %v272_v11  ;;  %v287_v17 = vld [vmem:[%s1484_s15 + $0x28] sm:$0xff]  ;;  %v270_v18 = vld [vmem:[%s1503_s11 + $0x60] sm:$0xff] }
  0x1a   : > { %1113 = vmatprep.subr.bf16.mxu1 %v1249_v2  ;;  %1125 = vmatprep.mubr.bf16.mxu1 %v298_v6  ;;  %v271_v19 = vld [vmem:[%s1503_s11 + $0x68] sm:$0xff]  ;;  %v299_v20 = vpack.c.bf16 %v285_v14, %v284_v13  ;;  %v300_v21 = vpack.c.bf16 %v287_v17, %v286_v16  ;;  %v288_v23 = vld [vmem:[%s1484_s15 + $0x30] sm:$0xff]  ;;  %v289_v24 = vld [vmem:[%s1484_s15 + $0x38] sm:$0xff] }
  0x1b   : > { %v280_v22 = vpack.c.bf16 %v271_v19, %v270_v18  ;;  %v290_v25 = vld [vmem:[%s1484_s15 + $0x40] sm:$0xff]  ;;  %v291_v26 = vld [vmem:[%s1484_s15 + $0x48] sm:$0xff]  ;;  %v268_v27 = vld [vmem:[%s1503_s11 + $0x50] sm:$0xff]  ;;  %v301_v29 = vpack.c.bf16 %v289_v24, %v288_v23 }
  0x1c   : > { %v269_v28 = vld [vmem:[%s1503_s11 + $0x58] sm:$0xff]  ;;  %v302_v30 = vpack.c.bf16 %v291_v26, %v290_v25  ;;  %v292_v32 = vld [vmem:[%s1484_s15 + $0x50] sm:$0xff]  ;;  %v294_v34 = vld [vmem:[%s1484_s15 + $0x60] sm:$0xff] }
  0x1d   : > { %1114 = vmatpush3.bf16.msra.mxu1 %v1249_v2  ;;  %v279_v31 = vpack.c.bf16 %v269_v28, %v268_v27  ;;  %v293_v33 = vld [vmem:[%s1484_s15 + $0x58] sm:$0xff]  ;;  %v295_v35 = vld [vmem:[%s1484_s15 + $0x68] sm:$0xff]  ;;  %v266_v36 = vld [vmem:[%s1503_s11 + $0x40] sm:$0xff] }
  0x1e   : > { %1115 = vmatprep.subr.bf16.mxu1 %v1250_v3  ;;  %v267_v37 = vld [vmem:[%s1503_s11 + $0x48] sm:$0xff]  ;;  %v303_v38 = vpack.c.bf16 %v293_v33, %v292_v32  ;;  %v304_v39 = vpack.c.bf16 %v295_v35, %v294_v34  ;;  %v296_v41 = vld [vmem:[%s1484_s15 + $0x70] sm:$0xff]  ;;  %v297_v42 = vld [vmem:[%s1484_s15 + $0x78] sm:$0xff]  ;;  %s1678_s15 = scalar_lea.hbm %s1725_s5, %s1060_s14 }
  0x1f   : > { %v278_v40 = vpack.c.bf16 %v267_v37, %v266_v36  ;;  %v264_v43 = vld [vmem:[%s1503_s11 + $0x30] sm:$0xff]  ;;  %v265_v44 = vld [vmem:[%s1503_s11 + $0x38] sm:$0xff]  ;;  %v305_v45 = vpack.c.bf16 %v297_v42, %v296_v41  ;;  %v262_v48 = vld [vmem:[%s1503_s11 + $0x20] sm:$0xff]  ;;  %v1385_v37 = vmov 0  }
  0x20   : > { %v277_v47 = vpack.c.bf16 %v265_v44, %v264_v43  ;;  %v263_v49 = vld [vmem:[%s1503_s11 + $0x28] sm:$0xff]  ;;  %v260_v51 = vld [vmem:[%s1503_s11 + $0x10] sm:$0xff]  ;;  %v261_v52 = vld [vmem:[%s1503_s11 + $0x18] sm:$0xff] }
  0x21   : > { %1116 = vmatpush3.bf16.msra.mxu1 %v1250_v3  ;;  %v276_v50 = vpack.c.bf16 %v263_v49, %v262_v48  ;;  %v275_v53 = vpack.c.bf16 %v261_v52, %v260_v51  ;;  %v258_v54 = vld [vmem:[%s1503_s11] sm:$0xff]  ;;  %v259_v55 = vld [vmem:[%s1503_s11 + $0x8] sm:$0xff]  ;;  %s243_s11 = scalar_lea.vmem [#allocation2], %s1028_s10 }
  0x22   : > { %1117 = vmatprep.subr.bf16.mxu1 %v1251_v7  ;;  %v274_v56 = vpack.c.bf16 %v259_v55, %v258_v54  ;;  %s941_s13 = sshll.u32 %s243_s11, 4  ;;  %s1673_s13 = int_to_ptr.vmem [resolvable:$true] %s941_s13 }
  0x23   : > { %s1323_s23 = scalar_lea.vmem %s1673_s13, 512  ;;  %p1330_p0 = scmp.lt.s32.totalorder %s1673_s13, %s1328_s25 }
  0x24   : > { %p1324_p11 = scmp.ne.s32.totalorder %s1673_s13, %s1323_s23 }
  0x25   : > { %1118 = vmatpush3.bf16.msra.mxu1 %v1251_v7 }
  0x26   : > { %1119 = vmatprep.subr.bf16.mxu1 %v1252_v8  ;;  %p1325_p12 = pnand %p1324_p11, %p1457_p5 }
  0x28   : > { %p1326_p13 = pneg %p1325_p12 }
  0x29   : > { %1120 = vmatpush3.bf16.msra.mxu1 %v1252_v8 }
  0x2a   : > { %1121 = vmatprep.subr.bf16.mxu1 %v1253_v9 }
  0x2d   : > { %1122 = vmatpush3.bf16.msra.mxu1 %v1253_v9 }
  0x2e   : > { %1123 = vmatprep.subr.bf16.mxu1 %v1254_v10 }
  0x31   : > { %1124 = vmatpush3.bf16.msra.mxu1 %v1254_v10 }
  0x32   : > { %1141 = vmatprep.subr.bf16.mxu1 %v281_v15 }
  0x34   : > { %1126 = vmatmul.mubr.bf16.vlgmr.msra.gmra.mxu1 %v299_v20 }
  0x35   : > { %1142 = vmatpush3.bf16.xpose.msra.mxu1 %v281_v15  ;;  %1129 = vmatprep.mubr.bf16.mxu1 %v300_v21 }
  0x36   : > { %1143 = vmatprep.subr.bf16.mxu1 %v280_v22 }
  0x3c   : > { %1130 = vmatmul.mubr.bf16.gmra.mxu1 %v301_v29  ;;  %v699_v29 = vlaneseq }
  0x3d   : > { %1144 = vmatpush3.bf16.xpose.msra.mxu1 %v280_v22  ;;  %1133 = vmatprep.mubr.bf16.mxu1 %v302_v30 }
  0x3e   : > { %1145 = vmatprep.subr.bf16.mxu1 %v279_v31  ;;  %v700_v33 = vshrl.u32 %v699_v29, 7 }
  0x40   : > { %v701_v36 = vsub.s32 0, %v700_v33 }
  0x44   : > { %1134 = vmatmul.mubr.bf16.gmra.mxu1 %v303_v38 }
  0x45   : > { %1146 = vmatpush3.bf16.xpose.msra.mxu1 %v279_v31  ;;  %1137 = vmatprep.mubr.bf16.mxu1 %v304_v39  ;;  %v696_v31 = vld [vmem:[%s256_s26] sm:$0x1]  ;;  %s1329_s26 = scalar_lea.vmem %s1328_s25, 1024 }
  0x46   : > { %1147 = vmatprep.subr.bf16.mxu1 %v278_v40  ;;  %vm697_vm1 = vcmp.gt.f32.partialorder %v696_v31, 0.5  ;;  %p1331_p1 = scmp.lt.s32.totalorder %s1329_s26, %s1323_s23 }
  0x47   : > { %v698_v38 = vsel %vm697_vm1, 1, %v1385_v37 }
  0x48   : > { %v702_v41 = vrot.slane %v698_v38, %v701_v36  ;;  %p1332_p2 = por %p1331_p1, %p1330_p0 }
  0x4a   : > { %vm703_vm2 = vcmp.eq.s32.totalorder %v702_v41, 1  ;;  %p1333_p3 = pnand %p1332_p2, %p1326_p13 }
  0x4c   : > { %1138 = vmatmul.mubr.bf16.gmra.mxu1 %v305_v45 }
  0x4d   : > { %1148 = vmatpush3.bf16.xpose.msra.mxu1 %v278_v40  ;;  %1157 = vmatprep.mubr.bf16.mxu1 %v1255_v46 }
  0x4e   : > { %1149 = vmatprep.subr.bf16.mxu1 %v277_v47 }
  0x55   : > { %1150 = vmatpush3.bf16.xpose.msra.mxu1 %v277_v47 }
  0x56   : > { %1151 = vmatprep.subr.bf16.mxu1 %v276_v50 }
  0x5d   : > { %1152 = vmatpush3.bf16.xpose.msra.mxu1 %v276_v50 }
  0x5e   : > { %1153 = vmatprep.subr.bf16.mxu1 %v275_v53 }
  0x65   : > { %1154 = vmatpush3.bf16.xpose.msra.mxu1 %v275_v53 }
  0x66   : > { %1155 = vmatprep.subr.bf16.mxu1 %v274_v56 }
  0x6d   : > { %1156 = vmatpush3.bf16.xpose.msra.mxu1 %v274_v56 }
  0x74   : > { %1158 = vmatmul.mubr.bf16.vlgmr.msra.gmra.mxu1 %v1256_v57 }
  0xf4   : > { %v1127_v58 = vpop.f32.mrf.mxu1 }
  0xf6   : > { %v404_v59 = vpop.f32.mrf.mxu1 }
  0xf8   : > { %v1128_v60 = vpop.f32.mrf.mxu1 }
  0xf9   : > { %v565_v61 = vpack.c.bf16 %v1128_v60, %v1127_v58 }
  0xfa   : > { %v407_v62 = vpop.f32.mrf.mxu1 }
  0xfb   : > { %v564_v63 = vpack.c.bf16 %v407_v62, %v404_v59 }
  0xfc   : > { %v1131_v0 = vpop.f32.mrf.mxu1 }
  0xfd   : > { %1169 = vmatprep.mubr.msk.bf16.mxu0 %vm574_vm0, %v564_v63  ;;  %v1257_v63 = vld [vmem:[%s1724_s4 + $0x10] sm:$0xff]  }
  0xfe   : > { %v420_v1 = vpop.f32.mrf.mxu1  ;;  %1161 = vmatprep.mubr.bf16.mxu1 %v1257_v63 }
 0x100   : > { %v1132_v2 = vpop.f32.mrf.mxu1 }
 0x101   : > { %v567_v19 = vpack.c.bf16 %v1132_v2, %v1131_v0  ;;  %v1258_v0 = vld [vmem:[%s1724_s4 + $0x18] sm:$0xff]  }
 0x102   : > { %v423_v3 = vpop.f32.mrf.mxu1  ;;  %1162 = vmatmul.mubr.bf16.gmra.mxu1 %v1258_v0 }
 0x103   : > { %v566_v18 = vpack.c.bf16 %v423_v3, %v420_v1 }
 0x104   : > { %v1135_v4 = vpop.f32.mrf.mxu1 }
 0x106   : > { %v436_v5 = vpop.f32.mrf.mxu1 }
 0x108   : > { %v1136_v6 = vpop.f32.mrf.mxu1 }
 0x109   : > { %v569_v21 = vpack.c.bf16 %v1136_v6, %v1135_v4 }
 0x10a   : > { %v439_v7 = vpop.f32.mrf.mxu1 }
 0x10b   : > { %v568_v20 = vpack.c.bf16 %v439_v7, %v436_v5 }
 0x10c   : > { %v1139_v8 = vpop.f32.mrf.mxu1 }
 0x10e   : > { %v452_v9 = vpop.f32.mrf.mxu1 }
 0x110   : > { %v1140_v10 = vpop.f32.mrf.mxu1 }
 0x111   : > { %v571_v23 = vpack.c.bf16 %v1140_v10, %v1139_v8 }
 0x112   : > { %v455_v11 = vpop.f32.mrf.mxu1 }
 0x113   : > { %v570_v22 = vpack.c.bf16 %v455_v11, %v452_v9 }
 0x134   : > { %v1159_v12 = vpop.f32.mrf.mxu1 }
 0x136   : > { %v533_v13 = vpop.f32.mrf.mxu1 }
 0x138   : > { %v1160_v14 = vpop.f32.mrf.mxu1 }
 0x139   : > { %v573_v15 = vpack.c.bf16 %v1160_v14, %v1159_v12 }
 0x13a   : > { %v536_v16 = vpop.f32.mrf.mxu1 }
 0x13b   : > { %v572_v17 = vpack.c.bf16 %v536_v16, %v533_v13  ;;  %1165 = vmatprep.subr.bf16.mxu0 %v573_v15 }
 0x13c   : > { %1166 = vmatpush3.bf16.msra.mxu0 %v573_v15 }
 0x13d   : > { %1167 = vmatprep.subr.bf16.mxu0 %v572_v17 }
 0x140   : > { %1168 = vmatpush3.bf16.msra.mxu0 %v572_v17 }
 0x143   : > { %1170 = vmatmul.mubr.msk.bf16.vlgmr.msra.gmra.mxu0 %vm574_vm0, %v565_v61 }
 0x144   : > { %1173 = vmatprep.mubr.msk.bf16.mxu0 %vm574_vm0, %v566_v18 }
 0x14b   : > { %1174 = vmatmul.mubr.msk.bf16.gmra.mxu0 %vm574_vm0, %v567_v19 }
 0x14c   : > { %1177 = vmatprep.mubr.msk.bf16.mxu0 %vm574_vm0, %v568_v20 }
 0x153   : > { %1178 = vmatmul.mubr.msk.bf16.gmra.mxu0 %vm574_vm0, %v569_v21 }
 0x154   : > { %1181 = vmatprep.mubr.msk.bf16.mxu0 %vm574_vm0, %v570_v22 }
 0x15b   : > { %1182 = vmatmul.mubr.msk.bf16.gmra.mxu0 %vm574_vm0, %v571_v23 }
 0x203   : > { %v1171_v24 = vpop.f32.mrf.mxu0 }
 0x204   : > { %v1572_v59 = vsel %vm703_vm2, %v1171_v24, -1e+30 }
 0x205   : > { %v633_v25 = vpop.f32.mrf.mxu0 }
 0x206   : > { %v1580_v61 = vsel %vm703_vm2, %v633_v25, -1e+30 }
 0x207   : > { %v1172_v26 = vpop.f32.mrf.mxu0 }
 0x208   : > { %v1576_v60 = vsel %vm703_vm2, %v1172_v26, -1e+30 }
 0x209   : > { %v636_v27 = vpop.f32.mrf.mxu0 }
 0x20a   : > { %v1584_v62 = vsel %vm703_vm2, %v636_v27, -1e+30 }
 0x20b   : > { %v1175_v28 = vpop.f32.mrf.mxu0 }
 0x20c   : > { %v710_v55 = vsel %vm703_vm2, %v1175_v28, -1e+30 }
 0x20d   : > { %v649_v30 = vpop.f32.mrf.mxu0 }
 0x20e   : > { %v708_v57 = vsel %vm703_vm2, %v649_v30, -1e+30 }
 0x20f   : > { %v1176_v32 = vpop.f32.mrf.mxu0 }
 0x210   : > { %v711_v56 = vsel %vm703_vm2, %v1176_v32, -1e+30 }
 0x211   : > { %v652_v34 = vpop.f32.mrf.mxu0 }
 0x212   : > { %v1568_v58 = vsel %vm703_vm2, %v652_v34, -1e+30 }
 0x213   : > { %v1179_v35 = vpop.f32.mrf.mxu0 }
 0x214   : > { %v714_v51 = vsel %vm703_vm2, %v1179_v35, -1e+30 }
 0x215   : > { %v665_v39 = vpop.f32.mrf.mxu0 }
 0x216   : > { %v712_v53 = vsel %vm703_vm2, %v665_v39, -1e+30 }
 0x217   : > { %v1180_v40 = vpop.f32.mrf.mxu0 }
 0x218   : > { %v715_v52 = vsel %vm703_vm2, %v1180_v40, -1e+30 }
 0x219   : > { %v668_v42 = vpop.f32.mrf.mxu0 }
 0x21a   : > { %v713_v54 = vsel %vm703_vm2, %v668_v42, -1e+30 }
 0x21b   : > { %v1183_v43 = vpop.f32.mrf.mxu0 }
 0x21c   : > { %v718_v44 = vsel %vm703_vm2, %v1183_v43, -1e+30 }
 0x21d   : > { %748 = vmax.xlane.f32.xlu0 %v718_v44  ;;  %v681_v45 = vpop.f32.mrf.mxu0 }
 0x21e   : > { %v716_v46 = vsel %vm703_vm2, %v681_v45, -1e+30 }
 0x21f   : > { %744 = vmax.xlane.f32.xlu1 %v716_v46  ;;  %v1184_v47 = vpop.f32.mrf.mxu0 }
 0x220   : > { %v719_v48 = vsel %vm703_vm2, %v1184_v47, -1e+30 }
 0x221   : > { %750 = vmax.xlane.f32.xlu0 %v719_v48  ;;  %v684_v49 = vpop.f32.mrf.mxu0 }
 0x222   : > { %v717_v50 = vsel %vm703_vm2, %v684_v49, -1e+30 }
 0x223   : > { %746 = vmax.xlane.f32.xlu1 %v717_v50 }
 0x225   : > { %740 = vmax.xlane.f32.xlu0 %v714_v51 }
 0x227   : > { %742 = vmax.xlane.f32.xlu1 %v715_v52 }
 0x229   : > { %736 = vmax.xlane.f32.xlu0 %v712_v53 }
 0x22b   : > { %738 = vmax.xlane.f32.xlu1 %v713_v54 }
 0x22d   : > { %732 = vmax.xlane.f32.xlu0 %v710_v55 }
 0x22f   : > { %734 = vmax.xlane.f32.xlu1 %v711_v56 }
 0x231   : > { %728 = vmax.xlane.f32.xlu0 %v708_v57 }
 0x233   : > { %730 = vmax.xlane.f32.xlu1 %v1568_v58 }
 0x235   : > { %724 = vmax.xlane.f32.xlu0 %v1572_v59 }
 0x237   : > { %726 = vmax.xlane.f32.xlu1 %v1576_v60 }
 0x239   : > { %720 = vmax.xlane.f32.xlu0 %v1580_v61 }
 0x23b   : > { %722 = vmax.xlane.f32.xlu1 %v1584_v62 }
 0x2a6   : > { %v749_v1 = vpop.xlane.xlu0 %748 }
 0x2a7   : > { %v766_v2 = vsub.f32 %v718_v44, %v749_v1  ;;  %v1646_v1 = vpop.f32.mrf.mxu1 }
 0x2a8   : > { %v745_v3 = vpop.xlane.xlu1 %744 }
 0x2a9   : > { %v796_v4 = vmul.f32 1.442695, %v766_v2  ;;  %v764_v5 = vsub.f32 %v716_v46, %v745_v3  ;;  %v549_v2 = vpop.f32.mrf.mxu1 }
 0x2aa   : > { %v751_v6 = vpop.xlane.xlu0 %750 }
 0x2ab   : > { %1259 = vpow2.f32 %v796_v4  ;;  %v792_v7 = vmul.f32 1.442695, %v764_v5  ;;  %v767_v8 = vsub.f32 %v719_v48, %v751_v6  ;;  %v1648_v3 = vpop.f32.mrf.mxu1 }
 0x2ac   : > { %v747_v9 = vpop.xlane.xlu1 %746  ;;  %v865_v4 = vpack.c.bf16 %v1648_v3, %v1646_v1 }
 0x2ad   : > { %v798_v10 = vmul.f32 1.442695, %v767_v8  ;;  %v765_v11 = vsub.f32 %v717_v50, %v747_v9  ;;  %1261 = vpow2.f32 %v792_v7  ;;  %v552_v5 = vpop.f32.mrf.mxu1 }
 0x2ae   : > { %v741_v12 = vpop.xlane.xlu0 %740  ;;  %v864_v6 = vpack.c.bf16 %v552_v5, %v549_v2 }
 0x2af   : > { %1263 = vpow2.f32 %v798_v10  ;;  %v794_v13 = vmul.f32 1.442695, %v765_v11  ;;  %v762_v14 = vsub.f32 %v714_v51, %v741_v12 }
 0x2b0   : > { %v743_v15 = vpop.xlane.xlu1 %742  ;;  %1201 = vmatprep.mubr.bf16.mxu0 %v864_v6 }
 0x2b1   : > { %v788_v16 = vmul.f32 1.442695, %v762_v14  ;;  %v763_v17 = vsub.f32 %v715_v52, %v743_v15  ;;  %1265 = vpow2.f32 %v794_v13 }
 0x2b2   : > { %v737_v18 = vpop.xlane.xlu0 %736 }
 0x2b3   : > { %1267 = vpow2.f32 %v788_v16  ;;  %v790_v19 = vmul.f32 1.442695, %v763_v17  ;;  %v760_v20 = vsub.f32 %v712_v53, %v737_v18 }
 0x2b4   : > { %v739_v21 = vpop.xlane.xlu1 %738 }
 0x2b5   : > { %v784_v22 = vmul.f32 1.442695, %v760_v20  ;;  %v761_v23 = vsub.f32 %v713_v54, %v739_v21  ;;  %1269 = vpow2.f32 %v790_v19 }
 0x2b6   : > { %v733_v24 = vpop.xlane.xlu0 %732 }
 0x2b7   : > { %1271 = vpow2.f32 %v784_v22  ;;  %v786_v25 = vmul.f32 1.442695, %v761_v23  ;;  %v758_v26 = vsub.f32 %v710_v55, %v733_v24 }
 0x2b8   : > { %v1593_v27 = vpop.eup %1259  ;;  %v735_v28 = vpop.xlane.xlu1 %734 }
 0x2b9   : > { %v780_v29 = vmul.f32 1.442695, %v758_v26  ;;  %v759_v30 = vsub.f32 %v711_v56, %v735_v28  ;;  %828 = vadd.xlane.f32.xlu0 %v1593_v27  ;;  %1273 = vpow2.f32 %v786_v25 }
 0x2ba   : > { %v729_v31 = vpop.xlane.xlu0 %728  ;;  %v1596_v32 = vpop.eup %1261 }
 0x2bb   : > { %1275 = vpow2.f32 %v780_v29  ;;  %v782_v33 = vmul.f32 1.442695, %v759_v30  ;;  %v756_v34 = vsub.f32 %v708_v57, %v729_v31 }
 0x2bc   : > { %v1598_v35 = vpop.eup %1263  ;;  %v731_v36 = vpop.xlane.xlu1 %730 }
 0x2bd   : > { %v776_v37 = vmul.f32 1.442695, %v756_v34  ;;  %v757_v38 = vsub.f32 %v1568_v58, %v731_v36  ;;  %824 = vadd.xlane.f32.xlu0 %v1596_v32  ;;  %830 = vadd.xlane.f32.xlu1 %v1598_v35  ;;  %1277 = vpow2.f32 %v782_v33 }
 0x2be   : > { %v725_v39 = vpop.xlane.xlu0 %724  ;;  %v1603_v40 = vpop.eup %1265 }
 0x2bf   : > { %1279 = vpow2.f32 %v776_v37  ;;  %v778_v41 = vmul.f32 1.442695, %v757_v38  ;;  %v754_v42 = vsub.f32 %v1572_v59, %v725_v39 }
 0x2c0   : > { %v1606_v43 = vpop.eup %1267  ;;  %v727_v44 = vpop.xlane.xlu1 %726 }
 0x2c1   : > { %v772_v45 = vmul.f32 1.442695, %v754_v42  ;;  %v755_v46 = vsub.f32 %v1576_v60, %v727_v44  ;;  %820 = vadd.xlane.f32.xlu0 %v1606_v43  ;;  %826 = vadd.xlane.f32.xlu1 %v1603_v40  ;;  %1281 = vpow2.f32 %v778_v41 }
 0x2c2   : > { %v721_v47 = vpop.xlane.xlu0 %720  ;;  %v1611_v48 = vpop.eup %1269 }
 0x2c3   : > { %1283 = vpow2.f32 %v772_v45  ;;  %v774_v49 = vmul.f32 1.442695, %v755_v46  ;;  %v752_v50 = vsub.f32 %v1580_v61, %v721_v47 }
 0x2c4   : > { %v1614_v51 = vpop.eup %1271  ;;  %v723_v52 = vpop.xlane.xlu1 %722 }
 0x2c5   : > { %v768_v53 = vmul.f32 1.442695, %v752_v50  ;;  %v753_v54 = vsub.f32 %v1584_v62, %v723_v52  ;;  %816 = vadd.xlane.f32.xlu0 %v1614_v51  ;;  %822 = vadd.xlane.f32.xlu1 %v1611_v48  ;;  %1285 = vpow2.f32 %v774_v49 }
 0x2c6   : > { %v1619_v55 = vpop.eup %1273 }
 0x2c7   : > { %1287 = vpow2.f32 %v768_v53  ;;  %v770_v56 = vmul.f32 1.442695, %v753_v54 }
 0x2c8   : > { %v1621_v57 = vpop.eup %1275 }
 0x2c9   : > { %812 = vadd.xlane.f32.xlu0 %v1621_v57  ;;  %818 = vadd.xlane.f32.xlu1 %v1619_v55  ;;  %1289 = vpow2.f32 %v770_v56 }
 0x2ca   : > { %v1625_v58 = vpop.eup %1277 }
 0x2cc   : > { %v1627_v59 = vpop.eup %1279 }
 0x2cd   : > { %808 = vadd.xlane.f32.xlu0 %v1627_v59  ;;  %814 = vadd.xlane.f32.xlu1 %v1625_v58 }
 0x2ce   : > { %v1631_v60 = vpop.eup %1281 }
 0x2d0   : > { %v1633_v61 = vpop.eup %1283 }
 0x2d1   : > { %804 = vadd.xlane.f32.xlu0 %v1633_v61  ;;  %810 = vadd.xlane.f32.xlu1 %v1631_v60 }
 0x2d2   : > { %v1637_v62 = vpop.eup %1285 }
 0x2d4   : > { %v1639_v63 = vpop.eup %1287 }
 0x2d5   : > { %800 = vadd.xlane.f32.xlu0 %v1639_v63  ;;  %806 = vadd.xlane.f32.xlu1 %v1637_v62 }
 0x2d6   : > { %v1643_v0 = vpop.eup %1289 }
 0x2d9   : > { %802 = vadd.xlane.f32.xlu1 %v1643_v0 }
 0x342   : > { %v829_v7 = vpop.xlane.xlu0 %828 }
 0x343   : > { %1291 = vrcp.f32 %v829_v7 }
 0x346   : > { %v825_v8 = vpop.xlane.xlu0 %824  ;;  %v831_v9 = vpop.xlane.xlu1 %830 }
 0x347   : > { %1293 = vrcp.f32 %v831_v9 }
 0x348   : > { %1295 = vrcp.f32 %v825_v8 }
 0x34a   : > { %v827_v10 = vpop.xlane.xlu1 %826  ;;  %v821_v11 = vpop.xlane.xlu0 %820 }
 0x34b   : > { %1297 = vrcp.f32 %v827_v10 }
 0x34c   : > { %1299 = vrcp.f32 %v821_v11 }
 0x34e   : > { %v823_v12 = vpop.xlane.xlu1 %822  ;;  %v817_v16 = vpop.xlane.xlu0 %816 }
 0x34f   : > { %1301 = vrcp.f32 %v823_v12 }
 0x350   : > { %v1292_v13 = vpop.eup %1291 }
 0x351   : > { %v862_v17 = vmul.f32 %v1292_v13, %v1593_v27 }
 0x352   : > { %v819_v14 = vpop.xlane.xlu1 %818  ;;  %v813_v29 = vpop.xlane.xlu0 %812 }
 0x353   : > { %1303 = vrcp.f32 %v819_v14 }
 0x354   : > { %v1294_v15 = vpop.eup %1293  ;;  %1305 = vrcp.f32 %v817_v16 }
 0x355   : > { %v863_v18 = vmul.f32 %v1294_v15, %v1598_v35  ;;  %v1296_v19 = vpop.eup %1295 }
 0x356   : > { %v860_v22 = vmul.f32 %v1296_v19, %v1596_v32  ;;  %v815_v24 = vpop.xlane.xlu1 %814  ;;  %v809_v35 = vpop.xlane.xlu0 %808 }
 0x357   : > { %v873_v20 = vpack.c.bf16 %v863_v18, %v862_v17  ;;  %1307 = vrcp.f32 %v815_v24 }
 0x358   : > { %v1298_v21 = vpop.eup %1297  ;;  %1309 = vrcp.f32 %v813_v29 }
 0x359   : > { %1185 = vmatprep.subr.bf16.mxu0 %v873_v20  ;;  %v861_v23 = vmul.f32 %v1298_v21, %v1603_v40  ;;  %v1300_v25 = vpop.eup %1299 }
 0x35a   : > { %1186 = vmatpush3.bf16.xpose.msra.mxu0 %v873_v20  ;;  %v858_v30 = vmul.f32 %v1300_v25, %v1606_v43  ;;  %v811_v34 = vpop.xlane.xlu1 %810  ;;  %v805_v42 = vpop.xlane.xlu0 %804 }
 0x35b   : > { %v872_v26 = vpack.c.bf16 %v861_v23, %v860_v22  ;;  %1311 = vrcp.f32 %v811_v34 }
 0x35c   : > { %v1302_v28 = vpop.eup %1301  ;;  %1313 = vrcp.f32 %v809_v35 }
 0x35d   : > { %1187 = vmatprep.subr.bf16.mxu0 %v872_v26  ;;  %v859_v27 = vmul.f32 %v1302_v28, %v1611_v48 }
 0x35e   : > { %v807_v40 = vpop.xlane.xlu1 %806  ;;  %v801_v49 = vpop.xlane.xlu0 %800 }
 0x35f   : > { %v871_v31 = vpack.c.bf16 %v859_v27, %v858_v30  ;;  %1315 = vrcp.f32 %v807_v40 }
 0x360   : > { %v1304_v33 = vpop.eup %1303  ;;  %1317 = vrcp.f32 %v805_v42 }
 0x361   : > { %v1306_v32 = vpop.eup %1305  ;;  %v857_v36 = vmul.f32 %v1304_v33, %v1619_v55 }
 0x362   : > { %1188 = vmatpush3.bf16.xpose.msra.mxu0 %v872_v26  ;;  %v856_v37 = vmul.f32 %v1306_v32, %v1614_v51  ;;  %v803_v47 = vpop.xlane.xlu1 %802 }
 0x363   : > { %1189 = vmatprep.subr.bf16.mxu0 %v871_v31  ;;  %1319 = vrcp.f32 %v803_v47 }
 0x364   : > { %v870_v38 = vpack.c.bf16 %v857_v36, %v856_v37  ;;  %v1308_v39 = vpop.eup %1307  ;;  %1321 = vrcp.f32 %v801_v49 }
 0x365   : > { %v1310_v41 = vpop.eup %1309  ;;  %v855_v43 = vmul.f32 %v1308_v39, %v1625_v58 }
 0x366   : > { %v854_v44 = vmul.f32 %v1310_v41, %v1621_v57 }
 0x368   : > { %v869_v45 = vpack.c.bf16 %v855_v43, %v854_v44  ;;  %v1312_v46 = vpop.eup %1311 }
 0x369   : > { %v1314_v48 = vpop.eup %1313  ;;  %v853_v50 = vmul.f32 %v1312_v46, %v1631_v60 }
 0x36a   : > { %1190 = vmatpush3.bf16.xpose.msra.mxu0 %v871_v31  ;;  %v852_v51 = vmul.f32 %v1314_v48, %v1627_v59 }
 0x36b   : > { %1191 = vmatprep.subr.bf16.mxu0 %v870_v38 }
 0x36c   : > { %v868_v52 = vpack.c.bf16 %v853_v50, %v852_v51  ;;  %v1316_v53 = vpop.eup %1315 }
 0x36d   : > { %v1318_v54 = vpop.eup %1317  ;;  %v851_v55 = vmul.f32 %v1316_v53, %v1637_v62 }
 0x36e   : > { %v850_v56 = vmul.f32 %v1318_v54, %v1633_v61 }
 0x370   : > { %v867_v57 = vpack.c.bf16 %v851_v55, %v850_v56  ;;  %v1320_v58 = vpop.eup %1319 }
 0x371   : > { %v1322_v2 = vpop.eup %1321  ;;  %v849_v60 = vmul.f32 %v1320_v58, %v1643_v0 }
 0x372   : > { %1192 = vmatpush3.bf16.xpose.msra.mxu0 %v870_v38  ;;  %v848_v59 = vmul.f32 %v1322_v2, %v1639_v63 }
 0x373   : > { %1193 = vmatprep.subr.bf16.mxu0 %v869_v45 }
 0x374   : > { %v866_v5 = vpack.c.bf16 %v849_v60, %v848_v59 }
 0x37a   : > { %1194 = vmatpush3.bf16.xpose.msra.mxu0 %v869_v45 }
 0x37b   : > { %1195 = vmatprep.subr.bf16.mxu0 %v868_v52 }
 0x382   : > { %1196 = vmatpush3.bf16.xpose.msra.mxu0 %v868_v52 }
 0x383   : > { %1197 = vmatprep.subr.bf16.mxu0 %v867_v57 }
 0x38a   : > { %1198 = vmatpush3.bf16.xpose.msra.mxu0 %v867_v57 }
 0x38b   : > { %1199 = vmatprep.subr.bf16.mxu0 %v866_v5 }
 0x392   : > { %1200 = vmatpush3.bf16.xpose.msra.mxu0 %v866_v5 }
 0x399   : > { %1202 = vmatmul.mubr.bf16.vlgmr.msra.gmra.mxu0 %v865_v4 }
 0x459   : > { %v1203_v61 = vpop.f32.mrf.mxu0 }
 0x45a   : > { %925 = vst [vmem:[%s243_s11 + $0x10] sm:$0xff] %v1203_v61 }
 0x45b   : > { %v908_v62 = vpop.f32.mrf.mxu0 }
 0x45c   : > { %923 = vst [vmem:[%s243_s11] sm:$0xff] %v908_v62 }
 0x45d   : > { %v1204_v63 = vpop.f32.mrf.mxu0 }
 0x45e   : > { %926 = vst [vmem:[%s243_s11 + $0x18] sm:$0xff] %v1204_v63 }
 0x45f   : > { %v911_v0 = vpop.f32.mrf.mxu0 }
 0x460   : > { %924 = vst [vmem:[%s243_s11 + $0x8] sm:$0xff] %v911_v0 }
 0x461   : > { %1336 = shalt.err (!%p1333_p3)
}
 0x462   : > { %s1337_s9 = scalar_lea.hbm %s1678_s15, 512  ;;  %s1341_s7 = scalar_lea.hbm %s1725_s5, 1024 }
 0x463   : > { %p1338_p4 = scmp.ne.s32.totalorder %s1678_s15, %s1337_s9  ;;  %p1342_p9 = scmp.lt.s32.totalorder %s1678_s15, %s1725_s5 }
 0x464   : > { %p1343_p10 = scmp.lt.s32.totalorder %s1341_s7, %s1337_s9 }
 0x465   : > { %p1339_p7 = pnand %p1338_p4, %p1457_p5 }
 0x466   : > { %p1344_p11 = por %p1343_p10, %p1342_p9 }
 0x467   : > { %p1340_p8 = pneg %p1339_p7 }
 0x469   : > { %p1345_p12 = pnand %p1344_p11, %p1340_p8 }
 0x46b   : > { %1348 = shalt.err (!%p1345_p12)
}
 0x46c   : > { %s1387_s11 = smov 128   ;;  %s1388_s14 = smov 8  }
 0x46d   : > { %1205 = dma.vmem_to_hbm [thread:$0]  (%p1457_p5), %s1673_s13, 512, %s1678_s15, %s1680_s17, %s1387_s11, %s1387_s11, %s1388_s14  }
 0x46e PF: > { %p1211_p13 = scmp.ge.s32.totalorder %s1383_s21, 2  ;;  %s956_s12 = sand.u32 1, %s1371_s18  }
 0x46f   : > { %s957_s16 = scalar_lea.sflag [#allocation3], %s956_s12 }
 0x470   : > { %p1208_p0 = pnand %p1211_p13, %p1461_p6 }
 0x472   : > { %p1209_p1 = pneg %p1208_p0 }
 0x474   : > { %1366 = dma.done.wait (%p1209_p1), %s957_s16, 512  }
 0x475   : > { %1368 = vsyncadd (%p1209_p1), %s957_s16, 4294966784  ;;  %p15_p2 = scmp.ge.s32.totalorder %s1444_s24, 4   ;;  %s1728_s18 = smov %s1375_s19 }
 0x476   : > { %s1729_s19 = smov %s1379_s20  ;;  %s1730_s20 = smov %s1455_s27 }
 0x477   : > { %s1731_s21 = smov %s1444_s24  ;;  %17 = sbr.rel (!%p15_p2) target bundleno = 3 (0x3), region = 81 }
 0x47c   :  { %962 = vsyncpa [#allocation3], 1 }
 0x47d   :  { %964 = vsyncpa [#allocation3 + $0x1], 1 }

</bundles_post_ra>
